<compile_context>
chip_gen: v5e
topology: v5e:2x2
jax: 0.10.0
libtpu: 0.0.40
codegen_flags: <defaults>
</compile_context>

<pallas_src>
import functools
import math

import jax
import jax.numpy as jnp
from jax import lax
from jax.experimental import pallas as pl
from jax.experimental.pallas import tpu as pltpu


_NEG_INF = -1e30  # finite: partially-masked rows identical, fully-masked rows no NaN


def _round_up(x, m):
    return (x + m - 1) // m * m


@functools.lru_cache(maxsize=None)
def _tpu_vmem_capacity():
    try:
        return int(pltpu.get_tpu_info().vmem_capacity_bytes)
    except Exception:
        return 128 * 1024 * 1024  # conservative fallback (v5e/v6e)


def _vmem_limit_bytes():
    return min(int(_tpu_vmem_capacity() * 0.55), 96 * 1024 * 1024)


# ----------------------------------------------------------------------------
# Tiled linear:  y = x @ w_t + b    (w_t is the ALREADY-TRANSPOSED nn.Linear weight)
# ----------------------------------------------------------------------------
def _linear_kernel(x_ref, w_ref, b_ref, o_ref, acc_ref):
    @pl.when(pl.program_id(2) == 0)
    def _init():
        acc_ref[...] = jnp.zeros_like(acc_ref)

    acc_ref[...] += jnp.dot(x_ref[...], w_ref[...],
                            preferred_element_type=jnp.float32)

    @pl.when(pl.program_id(2) == pl.num_programs(2) - 1)
    def _finalize():
        o_ref[...] = (acc_ref[...] + b_ref[...]).astype(o_ref.dtype)


def _choose_matmul_block(dim, preferred):
    """Return (block, padded_dim): largest preferred block dividing dim, else pad."""
    for c in preferred:
        if dim >= c and dim % c == 0:
            return c, dim
    if dim <= preferred[-1]:
        b = _round_up(dim, 8)
        return b, b
    b = preferred[-1]
    return b, _round_up(dim, b)


def linear(x, w_t, b, *, out_dtype=None, compute_dtype=jnp.bfloat16):
    """x: [M, K]; w_t: [K, N]; b: [N] -> [M, N].  MXU operands in compute_dtype,
    f32 accumulation, bias added at finalize."""
    M, K = x.shape
    N = w_t.shape[1]
    out_dtype = x.dtype if out_dtype is None else out_dtype

    tm, M_pad = _choose_matmul_block(M, (1024, 512, 256, 128))
    tn, N_pad = _choose_matmul_block(N, (1024, 512, 256, 128))
    tk, K_pad = _choose_matmul_block(K, (512, 256, 128))

    x = x.astype(compute_dtype)
    w_t = w_t.astype(compute_dtype)
    b2 = b.astype(jnp.float32).reshape(1, N)

    if M_pad != M or K_pad != K:
        x = jnp.pad(x, ((0, M_pad - M), (0, K_pad - K)))
    if K_pad != K or N_pad != N:
        w_t = jnp.pad(w_t, ((0, K_pad - K), (0, N_pad - N)))
    if N_pad != N:
        b2 = jnp.pad(b2, ((0, 0), (0, N_pad - N)))

    out = pl.pallas_call(
        _linear_kernel,
        out_shape=jax.ShapeDtypeStruct((M_pad, N_pad), out_dtype),
        grid=(M_pad // tm, N_pad // tn, K_pad // tk),
        in_specs=[
            pl.BlockSpec((tm, tk), lambda i, j, k: (i, k)),
            pl.BlockSpec((tk, tn), lambda i, j, k: (k, j)),
            pl.BlockSpec((1, tn), lambda i, j, k: (0, j)),
        ],
        out_specs=pl.BlockSpec((tm, tn), lambda i, j, k: (i, j)),
        scratch_shapes=[pltpu.VMEM((tm, tn), jnp.float32)],
        compiler_params=pltpu.CompilerParams(
            dimension_semantics=("parallel", "parallel", "arbitrary"),
            vmem_limit_bytes=_vmem_limit_bytes()),
    )(x, w_t, b2)

    if M_pad != M or N_pad != N:
        out = out[:M, :N]
    return out


# ----------------------------------------------------------------------------
# Flash-style multi-head attention on [B, S, E] / [B, E, T] / [B, T, E] operands.
# Grid = (B, S_pad // block_q, T_pad // block_k);  kv axis is the reduction.
# Heads are handled by a static in-kernel loop over lane-slices of E.
# ----------------------------------------------------------------------------
def _attn_kernel(q_ref, kT_ref, v_ref, *rest,
                 num_heads, head_dim, block_q, block_k,
                 kv_len, causal, has_mask, mask_head_bcast):
    if has_mask:
        mask_ref, o_ref, m_scr, l_scr, acc_scr = rest
    else:
        o_ref, m_scr, l_scr, acc_scr = rest

    H, D = num_heads, head_dim
    q_idx = pl.program_id(1)
    kv_idx = pl.program_id(2)
    kv_padded = (kv_len % block_k) != 0  # static

    @pl.when(kv_idx == 0)
    def _init():
        m_scr[...] = jnp.full_like(m_scr, _NEG_INF)
        l_scr[...] = jnp.zeros_like(l_scr)
        acc_scr[...] = jnp.zeros_like(acc_scr)

    def _process_block():
        # Dead-position mask shared across heads (causal and/or kv padding),
        # generated in-kernel from iota (zero HBM mask traffic for causal).
        dead = None
        if causal or kv_padded:
            cols = kv_idx * block_k + lax.broadcasted_iota(
                jnp.int32, (block_q, block_k), 1)
            if causal:
                rows = q_idx * block_q + lax.broadcasted_iota(
                    jnp.int32, (block_q, block_k), 0)
                dead = cols > rows
            if kv_padded:
                pad_dead = cols >= kv_len
                dead = pad_dead if dead is None else (dead | pad_dead)

        for h in range(H):
            lo = h * D
            q_h = q_ref[0, :, lo:lo + D]          # [bq, D]  bf16
            kT_h = kT_ref[0, lo:lo + D, :]        # [D, bk]  bf16 (pre-transposed K)
            s = jnp.dot(q_h, kT_h, preferred_element_type=jnp.float32)  # [bq, bk] f32
            if dead is not None:
                s = jnp.where(dead, _NEG_INF, s)
            if has_mask:
                hm = 0 if mask_head_bcast else h
                s = jnp.where(mask_ref[0, hm] != 0, _NEG_INF, s)

            # online softmax (statistics in f32)
            m_prev = m_scr[:, h:h + 1]
            m_new = jnp.maximum(m_prev, jnp.max(s, axis=-1, keepdims=True))
            alpha = jnp.exp(m_prev - m_new)
            p = jnp.exp(s - m_new)
            l_scr[:, h:h + 1] = alpha * l_scr[:, h:h + 1] + jnp.sum(
                p, axis=-1, keepdims=True)
            v_h = v_ref[0, :, lo:lo + D]          # [bk, D]  bf16
            acc_scr[:, lo:lo + D] = alpha * acc_scr[:, lo:lo + D] + jnp.dot(
                p.astype(jnp.bfloat16), v_h, preferred_element_type=jnp.float32)
            m_scr[:, h:h + 1] = m_new

    if causal:
        # Skip kv blocks that lie entirely above the diagonal for this q block.
        pl.when(kv_idx * block_k <= q_idx * block_q + (block_q - 1))(_process_block)
    else:
        _process_block()

    @pl.when(kv_idx == pl.num_programs(2) - 1)
    def _finalize():
        for h in range(H):
            lo = h * D
            inv_l = pl.reciprocal(l_scr[:, h:h + 1], approx=True)  # EUP, not VALU
            acc_scr[:, lo:lo + D] = acc_scr[:, lo:lo + D] * inv_l
        o_ref[0] = acc_scr[...].astype(o_ref.dtype)   # lane-dense [bq, E] store


def _choose_attn_blocks(S, T, E, H, mask_heads, out_itemsize, budget):
    def axis_block(dim, cand):
        if dim <= cand:
            blk = _round_up(dim, 8)
            return blk, blk
        return cand, _round_up(dim, cand)

    def vmem_est(bq, bk):
        bytes_ = 2 * (bq * E * 2 + E * bk * 2 + bk * E * 2)   # q, kT, v bf16, 2-deep
        bytes_ += 2 * bq * E * out_itemsize                   # output, 2-deep
        bytes_ += bq * E * 4 + 2 * bq * H * 4                 # f32 acc + m/l scratch
        if mask_heads:
            bytes_ += 2 * mask_heads * bq * bk                # int8 mask, 2-deep
        bytes_ += 6 * bq * bk * 4                             # per-head intermediates
        return bytes_

    for cq, ck in ((256, 256), (256, 128), (128, 128)):
        bq, s_pad = axis_block(S, cq)
        bk, t_pad = axis_block(T, ck)
        if vmem_est(bq, bk) <= budget:
            return bq, bk, s_pad, t_pad
    bq, s_pad = axis_block(S, 128)
    bk, t_pad = axis_block(T, 128)
    return bq, bk, s_pad, t_pad


def _flash_attention(q, k, v, num_heads, *, mask=None, causal=False,
                     out_dtype=jnp.bfloat16):
    """q: [B,S,E], k/v: [B,T,E]; mask: optional bool [B|1, H|1, S, T] (True=masked)."""
    B, S, E = q.shape
    T = k.shape[1]
    H = num_heads
    D = E // H

    has_mask = mask is not None
    mask_heads = 0
    if has_mask:
        mask = mask.astype(jnp.int8)
        mask_heads = mask.shape[1]

    budget = int(_tpu_vmem_capacity() * 0.40)
    block_q, block_k, S_pad, T_pad = _choose_attn_blocks(
        S, T, E, H, mask_heads, jnp.dtype(out_dtype).itemsize, budget)

    # Attention MXU operands are always bf16 (f32 softmax / accumulation in-kernel).
    q = q.astype(jnp.bfloat16)
    k = k.astype(jnp.bfloat16)
    v = v.astype(jnp.bfloat16)
    if S_pad != S:
        q = jnp.pad(q, ((0, 0), (0, S_pad - S), (0, 0)))
    if T_pad != T:
        k = jnp.pad(k, ((0, 0), (0, T_pad - T), (0, 0)))
        v = jnp.pad(v, ((0, 0), (0, T_pad - T), (0, 0)))
    kT = k.transpose(0, 2, 1)   # [B, E, T_pad] — the only host-side relayout

    grid = (B, S_pad // block_q, T_pad // block_k)

    in_specs = [
        pl.BlockSpec((1, block_q, E), lambda b, qi, ki: (b, qi, 0)),
        pl.BlockSpec((1, E, block_k), lambda b, qi, ki: (b, 0, ki)),
        pl.BlockSpec((1, block_k, E), lambda b, qi, ki: (b, ki, 0)),
    ]
    operands = [q, kT, v]

    mask_head_bcast = True
    if has_mask:
        if S_pad != S or T_pad != T:
            mask = jnp.pad(mask, ((0, 0), (0, 0), (0, S_pad - S), (0, T_pad - T)))
        Bm, Hm = mask.shape[0], mask.shape[1]
        mask_head_bcast = (Hm == 1)
        batch_varies = Bm > 1

        def mask_map(b, qi, ki):
            return (b if batch_varies else 0, 0, qi, ki)

        in_specs.append(pl.BlockSpec((1, Hm, block_q, block_k), mask_map))
        operands.append(mask)

    kernel = functools.partial(
        _attn_kernel, num_heads=H, head_dim=D, block_q=block_q, block_k=block_k,
        kv_len=T, causal=causal, has_mask=has_mask, mask_head_bcast=mask_head_bcast)

    flops = 4 * B * S_pad * T_pad * E                      # QK^T + PV
    bytes_accessed = (B * S_pad * E * 2 + 2 * B * T_pad * E * 2
                      + B * S_pad * E * jnp.dtype(out_dtype).itemsize)
    cost = pl.CostEstimate(flops=int(flops),
                           transcendentals=int(B * H * S_pad * T_pad),
                           bytes_accessed=int(bytes_accessed))

    out = pl.pallas_call(
        kernel,
        out_shape=jax.ShapeDtypeStruct((B, S_pad, E), out_dtype),
        grid=grid,
        in_specs=in_specs,
        out_specs=pl.BlockSpec((1, block_q, E), lambda b, qi, ki: (b, qi, 0)),
        scratch_shapes=[
            pltpu.VMEM((block_q, H), jnp.float32),   # running max  (per head)
            pltpu.VMEM((block_q, H), jnp.float32),   # running sum  (per head)
            pltpu.VMEM((block_q, E), jnp.float32),   # f32 output accumulator
        ],
        compiler_params=pltpu.CompilerParams(
            dimension_semantics=("parallel", "parallel", "arbitrary"),
            vmem_limit_bytes=_vmem_limit_bytes()),
        cost_estimate=cost,
    )(*operands)

    if S_pad != S:
        out = out[:, :S, :]
    return out


# ----------------------------------------------------------------------------
# Module wrapper (glue in plain JAX, heavy compute in Pallas)
# ----------------------------------------------------------------------------
def multi_head_attention(params, query, key, value, num_heads,
                         mask=None, causal=False, mxu_dtype=jnp.bfloat16):
    """
    query: [B, S, E], key/value: [B, T, E]
    mask:  optional bool [B|1, H|1, S, T] (True = masked), PyTorch-module semantics.
    causal: generate the causal mask in-kernel (combined with `mask` if both given).
    mxu_dtype: MXU operand dtype for the projections (attention always uses bf16
               operands with f32 accumulation / softmax).
    returns [B, S, E]
    """
    B, S, E = query.shape
    T = key.shape[1]
    H = num_heads
    D = E // H
    out_dtype = query.dtype
    scale = 1.0 / math.sqrt(D)

    # Pre-transpose PyTorch-layout weights; fold 1/sqrt(D) into the Q projection.
    wq_t = (params["wq"] * scale).T
    bq_b = params["bq"] * scale
    wk_t = params["wk"].T
    wv_t = params["wv"].T
    wo_t = params["wo"].T

    attn_in_dtype = jnp.bfloat16  # Q/K/V stored in bf16 (halves attention HBM traffic)

    if (query is key) and (key is value):
        # Self-attention: one fused [E, 3E] projection — activation read once.
        w_qkv = jnp.concatenate([wq_t, wk_t, wv_t], axis=1)
        b_qkv = jnp.concatenate([bq_b, params["bk"], params["bv"]])
        qkv = linear(query.reshape(B * S, E), w_qkv, b_qkv,
                     out_dtype=attn_in_dtype, compute_dtype=mxu_dtype)
        Q = qkv[:, :E].reshape(B, S, E)
        K = qkv[:, E:2 * E].reshape(B, S, E)
        V = qkv[:, 2 * E:].reshape(B, S, E)
    else:
        Q = linear(query.reshape(B * S, E), wq_t, bq_b,
                   out_dtype=attn_in_dtype, compute_dtype=mxu_dtype).reshape(B, S, E)
        if key is value:
            # Cross-attention with shared K/V source: fused [E, 2E] projection.
            w_kv = jnp.concatenate([wk_t, wv_t], axis=1)
            b_kv = jnp.concatenate([params["bk"], params["bv"]])
            kv = linear(key.reshape(B * T, E), w_kv, b_kv,
                        out_dtype=attn_in_dtype, compute_dtype=mxu_dtype)
            K = kv[:, :E].reshape(B, T, E)
            V = kv[:, E:].reshape(B, T, E)
        else:
            K = linear(key.reshape(B * T, E), wk_t, params["bk"],
                       out_dtype=attn_in_dtype, compute_dtype=mxu_dtype).reshape(B, T, E)
            V = linear(value.reshape(B * T, E), wv_t, params["bv"],
                       out_dtype=attn_in_dtype, compute_dtype=mxu_dtype).reshape(B, T, E)

    ctx = _flash_attention(Q, K, V, H, mask=mask, causal=causal,
                           out_dtype=jnp.bfloat16)          # [B, S, E], no head merge

    out = linear(ctx.reshape(B * S, E), wo_t, params["bo"],
                 out_dtype=out_dtype, compute_dtype=mxu_dtype)
    return out.reshape(B, S, E)


def init_params(key, embed_dim):
    """Deterministic init mimicking nn.Linear default (uniform +-1/sqrt(fan_in))."""
    bound = 1.0 / math.sqrt(embed_dim)
    ks = jax.random.split(key, 8)

    def u(k, shape):
        return jax.random.uniform(k, shape, jnp.float32, -bound, bound)

    return {
        "wq": u(ks[0], (embed_dim, embed_dim)), "bq": u(ks[1], (embed_dim,)),
        "wk": u(ks[2], (embed_dim, embed_dim)), "bk": u(ks[3], (embed_dim,)),
        "wv": u(ks[4], (embed_dim, embed_dim)), "bv": u(ks[5], (embed_dim,)),
        "wo": u(ks[6], (embed_dim, embed_dim)), "bo": u(ks[7], (embed_dim,)),
    }


def reference_mha(params, query, key, value, num_heads, mask=None):
    """Pure-JAX f32 reference (mirrors the PyTorch module) for correctness checks."""
    B, S, E = query.shape
    T = key.shape[1]
    H, D = num_heads, E // num_heads
    Q = query @ params["wq"].T + params["bq"]
    K = key @ params["wk"].T + params["bk"]
    V = value @ params["wv"].T + params["bv"]
    Q = Q.reshape(B, S, H, D).transpose(0, 2, 1, 3)
    K = K.reshape(B, T, H, D).transpose(0, 2, 1, 3)
    V = V.reshape(B, T, H, D).transpose(0, 2, 1, 3)
    scores = jnp.einsum("bhsd,bhtd->bhst", Q, K) / math.sqrt(D)
    if mask is not None:
        scores = jnp.where(mask, -jnp.inf, scores)
    probs = jax.nn.softmax(scores, axis=-1)
    ctx = jnp.einsum("bhst,bhtd->bhsd", probs, V)
    ctx = ctx.transpose(0, 2, 1, 3).reshape(B, S, E)
    return ctx @ params["wo"].T + params["bo"]


if __name__ == "__main__":
    B, S, E, H = 2, 8, 32, 4
    Tc = 12  # cross-attention kv length, deliberately not a multiple of 8 (exercises padding)

    root = jax.random.PRNGKey(0)
    kx, kq2, kkv, kp = jax.random.split(root, 4)

    x = jax.random.normal(kx, (B, S, E), jnp.float32)
    params = init_params(kp, E)

    causal_mask = jnp.broadcast_to(
        jnp.triu(jnp.ones((S, S), dtype=bool), k=1), (B, H, S, S))

    # 1) self-attention, causal mask generated in-kernel (fused QKV, block skipping)
    out_causal = jax.block_until_ready(
        multi_head_attention(params, x, x, x, H, causal=True))
    ref_causal = reference_mha(params, x, x, x, H, mask=causal_mask)
    assert out_causal.shape == (B, S, E)
    assert jnp.allclose(out_causal, ref_causal, atol=5e-2, rtol=5e-2), \
        "causal path mismatch vs JAX reference"

    # 2) self-attention with an explicit boolean mask streamed as int8
    out_mask = jax.block_until_ready(
        multi_head_attention(params, x, x, x, H, mask=causal_mask))
    assert jnp.allclose(out_mask, ref_causal, atol=5e-2, rtol=5e-2), \
        "explicit-mask path mismatch vs JAX reference"

    # 3) cross-attention (query != key == value), kv length padded in the wrapper
    q_in = jax.random.normal(kq2, (B, S, E), jnp.float32)
    kv_in = jax.random.normal(kkv, (B, Tc, E), jnp.float32)
    out_cross = jax.block_until_ready(
        multi_head_attention(params, q_in, kv_in, kv_in, H))
    ref_cross = reference_mha(params, q_in, kv_in, kv_in, H, mask=None)
    assert out_cross.shape == (B, S, E)
    assert jnp.allclose(out_cross, ref_cross, atol=5e-2, rtol=5e-2), \
        "cross-attention path mismatch vs JAX reference"

    print("KERNEL_OK")
</pallas_src>

<mosaic_0001>
module attributes {stable_mosaic.version = 11 : i64} {
  func.func @_linear_kernel(%arg0: i32, %arg1: i32, %arg2: i32, %arg3: memref<16x32xbf16, #tpu.memory_space<vmem>>, %arg4: memref<32x96xbf16, #tpu.memory_space<vmem>>, %arg5: memref<1x96xf32, #tpu.memory_space<vmem>>, %arg6: memref<16x96xbf16, #tpu.memory_space<vmem>>, %arg7: memref<16x96xf32, #tpu.memory_space<vmem>>) attributes {dimension_semantics = [#tpu.dimension_semantics<parallel>, #tpu.dimension_semantics<parallel>, #tpu.dimension_semantics<arbitrary>], iteration_bounds = array<i64: 1, 1, 1>, scalar_prefetch = 0 : i64, scratch_operands = 1 : i64, tpu.core_type = #tpu.core_type<tc>, window_params = [{transform_indices = @transform_0, window_bounds = array<i64: 16, 32>}, {transform_indices = @transform_1, window_bounds = array<i64: 32, 96>}, {transform_indices = @transform_2, window_bounds = array<i64: 1, 96>}, {transform_indices = @transform_3, window_bounds = array<i64: 16, 96>}]} {
    %c0_i32 = arith.constant 0 : i32
    %0 = arith.cmpi eq, %arg2, %c0_i32 : i32
    %1 = arith.extui %0 : i1 to i32
    %c0_i32_0 = arith.constant 0 : i32
    %2 = arith.cmpi ne, %1, %c0_i32_0 : i32
    scf.if %2 {
      %cst_10 = arith.constant 0.000000e+00 : f32
      %12 = vector.broadcast %cst_10 : f32 to vector<16x96xf32>
      %c0_11 = arith.constant 0 : index
      %c0_12 = arith.constant 0 : index
      %13 = vector.load %arg7[%c0_11, %c0_12] : memref<16x96xf32, #tpu.memory_space<vmem>>, vector<16x96xf32>
      tpu.vector_store %arg7[%c0_11, %c0_12], %12 {strides = array<i32>} : memref<16x96xf32, #tpu.memory_space<vmem>>, vector<16x96xf32>,
    } else {
    }
    %c0 = arith.constant 0 : index
    %c0_1 = arith.constant 0 : index
    %3 = vector.load %arg7[%c0, %c0_1] : memref<16x96xf32, #tpu.memory_space<vmem>>, vector<16x96xf32>
    %c0_2 = arith.constant 0 : index
    %c0_3 = arith.constant 0 : index
    %4 = vector.load %arg3[%c0_2, %c0_3] : memref<16x32xbf16, #tpu.memory_space<vmem>>, vector<16x32xbf16>
    %c0_4 = arith.constant 0 : index
    %c0_5 = arith.constant 0 : index
    %5 = vector.load %arg4[%c0_4, %c0_5] : memref<32x96xbf16, #tpu.memory_space<vmem>>, vector<32x96xbf16>
    %cst = arith.constant dense<0.000000e+00> : vector<16x96xf32>
    %6 = tpu.matmul %4, %5, %cst {dimension_numbers = #tpu.dot_dimension_numbers<[1], [0], [0], [1], [0, 0, 1, 1], [], []>} : vector<16x32xbf16>, vector<32x96xbf16>, vector<16x96xf32> -> vector<16x96xf32>
    %7 = arith.addf %3, %6 : vector<16x96xf32>
    %c0_6 = arith.constant 0 : index
    %c0_7 = arith.constant 0 : index
    %8 = vector.load %arg7[%c0_6, %c0_7] : memref<16x96xf32, #tpu.memory_space<vmem>>, vector<16x96xf32>
    tpu.vector_store %arg7[%c0_6, %c0_7], %7 {strides = array<i32>} : memref<16x96xf32, #tpu.memory_space<vmem>>, vector<16x96xf32>,
    %c0_i32_8 = arith.constant 0 : i32
    %9 = arith.cmpi eq, %arg2, %c0_i32_8 : i32
    %10 = arith.extui %9 : i1 to i32
    %c0_i32_9 = arith.constant 0 : i32
    %11 = arith.cmpi ne, %10, %c0_i32_9 : i32
    scf.if %11 {
      %c0_10 = arith.constant 0 : index
      %c0_11 = arith.constant 0 : index
      %12 = vector.load %arg7[%c0_10, %c0_11] : memref<16x96xf32, #tpu.memory_space<vmem>>, vector<16x96xf32>
      %c0_12 = arith.constant 0 : index
      %c0_13 = arith.constant 0 : index
      %13 = vector.load %arg5[%c0_12, %c0_13] : memref<1x96xf32, #tpu.memory_space<vmem>>, vector<1x96xf32>
      %14 = vector.broadcast %13 : vector<1x96xf32> to vector<16x96xf32>
      %15 = arith.addf %12, %14 : vector<16x96xf32>
      %16 = arith.truncf %15 : vector<16x96xf32> to vector<16x96xbf16>
      %c0_14 = arith.constant 0 : index
      %c0_15 = arith.constant 0 : index
      %17 = vector.load %arg6[%c0_14, %c0_15] : memref<16x96xbf16, #tpu.memory_space<vmem>>, vector<16x96xbf16>
      tpu.vector_store %arg6[%c0_14, %c0_15], %16 {strides = array<i32>} : memref<16x96xbf16, #tpu.memory_space<vmem>>, vector<16x96xbf16>,
    } else {
    }
    return
  }
  func.func @transform_0(%arg0: i32, %arg1: i32, %arg2: i32) -> (i32, i32) {
    %c0_i32 = arith.constant 0 : i32
    return %arg0, %arg2 : i32, i32
  }
  func.func @transform_1(%arg0: i32, %arg1: i32, %arg2: i32) -> (i32, i32) {
    %c0_i32 = arith.constant 0 : i32
    return %arg2, %arg1 : i32, i32
  }
  func.func @transform_2(%arg0: i32, %arg1: i32, %arg2: i32) -> (i32, i32) {
    %c0_i32 = arith.constant 0 : i32
    %c0_i32_0 = arith.constant 0 : i32
    return %c0_i32, %arg1 : i32, i32
  }
  func.func @transform_3(%arg0: i32, %arg1: i32, %arg2: i32) -> (i32, i32) {
    %c0_i32 = arith.constant 0 : i32
    return %arg0, %arg1 : i32, i32
  }
}

</mosaic_0001>

<bundles_post_ra>
// kernel: tpu_custom_call.1
= control target key start
LH: loop header
LB: loop body
LE: loop exit
PB: predicated region body
PF: predicated region fallthrough
CT: control target
= control target key end

     0   :  { %8 = vsyncpa [#allocation4], 0  ;;  %s291_s0 = inlined_call_operand.hbm [shape: bf16[16,32], index: 0, kind: input, shape index: {}]   ;;  %s292_s1 = inlined_call_operand.hbm [shape: bf16[32,96], index: 1, kind: input, shape index: {}]   ;;  %s293_s2 = inlined_call_operand.vmem [shape: f32[1,96], index: 2, kind: input, shape index: {}]   ;;  %s294_s3 = inlined_call_operand.hbm [shape: bf16[16,96], index: 3, kind: output, shape index: {}]  }
   0x1   :  { %9 = vsyncpa [#allocation7], 0 }
   0x2   :  { %10 = vsyncpa [#allocation5], 0  ;;  %s15_s14 = sshll.u32 %s291_s0, 4  ;;  %s240_s15 = smov [#allocation3]   ;;  %s16_s14 = int_to_ptr.hbm [resolvable:$true] %s15_s14 }
   0x3   :  { %s17_s16 = sshll.u32 %s240_s15, 4  ;;  %s28_s19 = sshll.u32 %s292_s1, 4  ;;  %s18_s16 = int_to_ptr.vmem [resolvable:$true] %s17_s16  ;;  %s29_s19 = int_to_ptr.hbm [resolvable:$true] %s28_s19 }
   0x4   :  { %s241_s20 = smov 64   ;;  %s242_s21 = smov 4  }
   0x5   :  { %23 = dma.hbm_to_vmem [thread:$0]  %s16_s14, 128, %s18_s16, [#allocation4], %s241_s20, %s241_s20, %s242_s21  }
   0x6   :  { %s243_s22 = smov [#allocation6]  }
   0x7   :  { %s30_s23 = sshll.u32 %s243_s22, 4  ;;  %s31_s23 = int_to_ptr.vmem [resolvable:$true] %s30_s23 }
   0x8   :  { %36 = dma.hbm_to_vmem [thread:$0]  %s29_s19, 256, %s31_s23, [#allocation7], %s241_s20, %s241_s20, %s242_s21  }
   0x9   :  { %234 = dma.done.wait [#allocation4], 128  }
   0xa   :  { %235 = vsyncadd [#allocation4], 4294967168 }
   0xb   :  { %236 = dma.done.wait [#allocation7], 256  }
   0xc   :  { %237 = vsyncadd [#allocation7], 4294967040  ;;  %vm52_vm0 = vcmask 785408   ;;  %v244_v0 = vmov 0.0   ;;  %v154_v1 = vld [vmem:[#allocation6 + $0x8] sm:$0xff]  ;;  %v153_v2 = vld [vmem:[#allocation6] sm:$0xff] }
   0xd   :  { %53 = vst.msk [vmem:[#allocation2] sm:$0xff] %vm52_vm0, %v244_v0  ;;  %90 = vmatpush.bf16.msra.mxu0 %v154_v1  ;;  %v152_v3 = vld [vmem:[#allocation3] sm:$0xff]  ;;  %vm80_vm1 = vcmask 261120   ;;  %v161_v8 = vld [vmem:[%s293_s2] ss:$0 sm:$0xff]  ;;  %vm116_vm2 = vcmask 781312  }
   0xe   :  { %54 = vst.msk [vmem:[#allocation2 + $0x8] sm:$0xff] %vm52_vm0, %v244_v0  ;;  %s245_s24 = smov [#allocation8]   ;;  %s125_s28 = sshll.u32 %s294_s3, 4  ;;  %s126_s28 = int_to_ptr.hbm [resolvable:$true] %s125_s28 }
   0xf   :  { %s123_s25 = sshll.u32 %s245_s24, 4  ;;  %s124_s25 = int_to_ptr.vmem [resolvable:$true] %s123_s25 }
  0x11   :  { %91 = vmatpush.bf16.msra.mxu0 %v153_v2 }
  0x14   :  { %151 = vmatmul.msk.bf16.vlgmr.msra.gmra.mxu0 %vm80_vm1, %v152_v3  ;;  %v55_v4 = vld [vmem:[#allocation2] sm:$0xff] }
  0x15   :  { %v56_v7 = vld [vmem:[#allocation2 + $0x8] sm:$0xff] }
  0x91   :  { %v93_v5 = vpop.f32.mrf.mxu0 }
  0x92   :  { %v98_v6 = vadd.f32 %v93_v5, %v55_v4 }
  0x94   :  { %101 = vst.msk [vmem:[#allocation2] sm:$0xff] %vm52_vm0, %v98_v6 }
  0x99   :  { %v95_v9 = vpop.f32.mrf.mxu0 }
  0x9a   :  { %v99_v10 = vadd.f32 %v95_v9, %v56_v7 }
  0x9b   :  { %v106_v11 = vld [vmem:[#allocation2] sm:$0xff] }
  0x9c   :  { %102 = vst.msk [vmem:[#allocation2 + $0x8] sm:$0xff] %vm52_vm0, %v99_v10  ;;  %v112_v12 = vadd.f32 %v161_v8, %v106_v11 }
  0x9e   :  { %v114_v13 = vpack.c.bf16 %v112_v12, %v112_v12 }
  0xa0   :  { %117 = vst.msk [vmem:[#allocation8] sm:$0xf] %vm116_vm2, %v114_v13 }
  0xa3   :  { %v107_v14 = vld [vmem:[#allocation2 + $0x8] sm:$0xff] }
  0xa4   :  { %v113_v15 = vadd.f32 %v161_v8, %v107_v14 }
  0xa6   :  { %v115_v16 = vpack.c.bf16 %v113_v15, %v113_v15 }
  0xa8   :  { %118 = vst.msk [vmem:[#allocation8 + $0x4] sm:$0xf] %vm116_vm2, %v115_v16 }
  0xa9   :  { %131 = dma.vmem_to_hbm [thread:$0]  %s124_s25, 128, %s126_s28, [#allocation5], %s241_s20, %s241_s20, %s242_s21  }
  0xaa   :  { %238 = dma.done.wait [#allocation5], 128  }
  0xab   :  { %239 = vsyncadd [#allocation5], 4294967168 }
  0xac   :  { %136 = vsyncpa [#allocation4], 1 }
  0xad   :  { %137 = vsyncpa [#allocation7], 1 }
  0xae   :  { %138 = vsyncpa [#allocation5], 1 }

</bundles_post_ra>
